<compile_context>
chip_gen: v7x
topology: tpu7x:2x2x1
jax: 0.10.0
libtpu: 0.0.40
codegen_flags: <defaults>
</compile_context>

<pallas_src>
import functools

import jax
import jax.numpy as jnp
from jax import lax
from jax.experimental import pallas as pl
from jax.experimental.pallas import tpu as pltpu


def _round_up(v, m):
    return (v + m - 1) // m * m


def _self_attention_kernel(x_ref, w_ref, b_ref, gamma_ref, out_ref, attn_ref,
                           *, c, qk_pad):
    gamma = gamma_ref[0]                       # scalar from SMEM
    x = x_ref[0]                               # (C, N) f32 (kept f32 for the residual)
    w = w_ref[...]                             # (Cf, C)  bf16  (fused q/k/v weights)
    b = b_ref[...]                             # (Cf, 1)  f32   (fused biases)

    # Fused q/k/v projection: one MXU pass, one bias+ReLU VPU pass.
    h = jnp.dot(w, x.astype(jnp.bfloat16),
                preferred_element_type=jnp.float32)                 # (Cf, N) f32
    h = jnp.maximum(h + b, 0.0)

    # Sublane-tile-aligned slices of the fused f32 projection (free views),
    # then cast per-slice to bf16 MXU operands.  The padded q/k rows are
    # exactly zero (zero weight+bias, ReLU(0)=0) so contracting over the full
    # qk_pad rows leaves the energy unchanged.
    q = h[0:qk_pad].astype(jnp.bfloat16)               # (qk_pad, N)
    k = h[qk_pad:2 * qk_pad].astype(jnp.bfloat16)      # (qk_pad, N)
    v = h[2 * qk_pad:2 * qk_pad + c].astype(jnp.bfloat16)   # (C, N)

    # energy[n, m] = sum_c q[c, n] * k[c, m]   (torch: proj_query @ proj_key)
    energy = lax.dot_general(q, k, (((0,), (0,)), ((), ())),
                             preferred_element_type=jnp.float32)    # (N, N) f32

    # Row softmax (lane reductions); denominator via the EUP approx reciprocal.
    m = jnp.max(energy, axis=-1, keepdims=True)
    e = jnp.exp(energy - m)
    attn = e * pl.reciprocal(jnp.sum(e, axis=-1, keepdims=True), approx=True)
    attn_ref[0] = attn.astype(attn_ref.dtype)
    # TODO(synk): if the caller tolerates it, returning attn in bf16 halves the
    # dominant (B,N,N) HBM writeback.

    # out[c, n] = sum_m v[c, m] * attn[n, m]  — trans_b MXU contraction that
    # yields (C, N) directly: no output transpose, lane-dense store.
    out = lax.dot_general(v, attn.astype(jnp.bfloat16),
                          (((1,), (1,)), ((), ())),
                          preferred_element_type=jnp.float32)        # (C, N) f32
    out_ref[0] = (gamma * out + x).astype(out_ref.dtype)


@jax.jit
def self_attention_forward(x, wq, bq, wk, bk, wv, bv, gamma):
    """x: (B, C, N); wq/wk: (C//8, C); wv: (C, C); biases: (Cout, 1); gamma: (1,)."""
    B, C, N = x.shape
    Cq = wq.shape[0]
    qk_pad = _round_up(max(Cq, 1), 8)          # pad q/k sections to sublane tiles
    Cf = 2 * qk_pad + C

    # Stack the three (BN-folded) projection weights/biases once.  Padding rows
    # MUST stay exactly zero: the kernel contracts the full qk_pad rows and
    # relies on ReLU(0*x + 0) == 0 for the padded q/k channels.
    w_f = jnp.zeros((Cf, C), jnp.float32)
    w_f = w_f.at[0:Cq].set(wq)
    w_f = w_f.at[qk_pad:qk_pad + Cq].set(wk)
    w_f = w_f.at[2 * qk_pad:2 * qk_pad + C].set(wv)
    b_f = jnp.zeros((Cf, 1), jnp.float32)
    b_f = b_f.at[0:Cq].set(bq)
    b_f = b_f.at[qk_pad:qk_pad + Cq].set(bk)
    b_f = b_f.at[2 * qk_pad:2 * qk_pad + C].set(bv)
    w_bf16 = w_f.astype(jnp.bfloat16)          # MXU operand only; math stays f32
    gamma_s = jnp.asarray(gamma, jnp.float32).reshape((1,))

    kernel = functools.partial(_self_attention_kernel, c=C, qk_pad=qk_pad)

    # Per-batch grid: full double-buffered DMA overlap (~0.35 us/step overhead is
    # negligible vs two NxN matmuls + softmax per batch), and the parallel axis
    # shards across both v7x TensorCores.
    grid_spec = pltpu.PrefetchScalarGridSpec(
        num_scalar_prefetch=0,
        grid=(B,),
        in_specs=[
            pl.BlockSpec((1, C, N), lambda b: (b, 0, 0)),         # x (1 batch / step)
            pl.BlockSpec((Cf, C), lambda b: (0, 0)),              # fused W (bf16)
            pl.BlockSpec((Cf, 1), lambda b: (0, 0)),              # fused bias (f32)
            pl.BlockSpec(memory_space=pltpu.MemorySpace.SMEM),    # gamma scalar
        ],
        out_specs=[
            pl.BlockSpec((1, C, N), lambda b: (b, 0, 0)),         # out
            pl.BlockSpec((1, N, N), lambda b: (b, 0, 0)),         # attention
        ],
    )
    out_shape = (
        jax.ShapeDtypeStruct((B, C, N), x.dtype),
        jax.ShapeDtypeStruct((B, N, N), x.dtype),
    )

    # Explicit per-step VMEM budget (double-buffered x/out/attn blocks + fused
    # weights + in-kernel intermediates), with generous headroom, capped well
    # under v7x's 64 MiB physical VMEM.
    per_step_bytes = 2 * (2 * C * N * 4 + N * N * 4) + Cf * C * 2 + Cf * 4
    vmem_limit = int(min(32 * 1024 * 1024, max(4 * 1024 * 1024, 8 * per_step_bytes)))

    # TODO(synk): for large N (real voxel counts) the (N, N) energy/softmax must
    # be flash-tiled (kv grid axis + online-softmax scratch) to fit v7x's 64 MiB
    # VMEM; at N=128 the full block is only 64 KiB so it is unnecessary.
    return pl.pallas_call(
        kernel,
        out_shape=out_shape,
        grid_spec=grid_spec,
        compiler_params=pltpu.CompilerParams(
            dimension_semantics=("parallel",),
            vmem_limit_bytes=vmem_limit),
    )(x, w_bf16, b_f, gamma_s)


def fold_bn(w, b, bn_gamma, bn_beta, bn_mean, bn_var, eps=1e-5):
    """Fold eval-mode BatchNorm1d into the preceding 1x1 conv (matmul)."""
    scale = bn_gamma / jnp.sqrt(bn_var + eps)
    w_f = w * scale[:, None]
    b_f = scale * (b - bn_mean) + bn_beta
    return w_f, b_f[:, None]   # bias as (Cout, 1) so it broadcasts over N


def ref_forward(x, wq, bq, wk, bk, wv, bv, gamma):
    """Pure-JAX f32 reference of the torch forward (BN already folded).

    Biases are (Cout, 1); gamma is (1,).
    """
    q = jax.nn.relu(jnp.einsum('oc,bcn->bon', wq, x) + bq[None])    # (B, C//8, N)
    k = jax.nn.relu(jnp.einsum('oc,bcn->bon', wk, x) + bk[None])    # (B, C//8, N)
    v = jax.nn.relu(jnp.einsum('oc,bcn->bon', wv, x) + bv[None])    # (B, C, N)
    energy = jnp.einsum('bcn,bcm->bnm', q, k)                       # (B, N, N)
    attn = jax.nn.softmax(energy, axis=-1)
    out = jnp.einsum('bcm,bnm->bcn', v, attn)
    out = gamma[0] * out + x
    return out, attn


if __name__ == "__main__":
    B, C, N = 2, 32, 128   # in_dim = 32 -> C//8 = 4
    Cq = C // 8

    key = jax.random.PRNGKey(0)
    keys = jax.random.split(key, 11)

    x = jax.random.normal(keys[0], (B, C, N), dtype=jnp.float32)

    # Conv1d(kernel_size=1) weights: (Cout, Cin); biases (Cout,)
    wq_raw = jax.random.normal(keys[1], (Cq, C), jnp.float32) * 0.1
    bq_raw = jax.random.normal(keys[2], (Cq,), jnp.float32) * 0.1
    wk_raw = jax.random.normal(keys[3], (Cq, C), jnp.float32) * 0.1
    bk_raw = jax.random.normal(keys[4], (Cq,), jnp.float32) * 0.1
    wv_raw = jax.random.normal(keys[5], (C, C), jnp.float32) * 0.1
    bv_raw = jax.random.normal(keys[6], (C,), jnp.float32) * 0.1

    # BatchNorm1d parameters (eval-mode statistics, folded into the conv).
    bnq_g = 1.0 + 0.1 * jax.random.normal(keys[7], (Cq,), jnp.float32)
    bnq_b = 0.1 * jax.random.normal(keys[8], (Cq,), jnp.float32)
    bnk_g = 1.0 + 0.1 * jax.random.normal(keys[9], (Cq,), jnp.float32)
    bnk_b = 0.1 * jax.random.normal(keys[10], (Cq,), jnp.float32)
    bnv_g = jnp.ones((C,), jnp.float32)
    bnv_b = jnp.zeros((C,), jnp.float32)
    zeros_q, ones_q = jnp.zeros((Cq,), jnp.float32), jnp.ones((Cq,), jnp.float32)
    zeros_v, ones_v = jnp.zeros((C,), jnp.float32), jnp.ones((C,), jnp.float32)

    wq, bq = fold_bn(wq_raw, bq_raw, bnq_g, bnq_b, zeros_q, ones_q)
    wk, bk = fold_bn(wk_raw, bk_raw, bnk_g, bnk_b, zeros_q, ones_q)
    wv, bv = fold_bn(wv_raw, bv_raw, bnv_g, bnv_b, zeros_v, ones_v)

    # nn.Parameter(torch.zeros(1)) in __init__; set nonzero here so the
    # attention path is exercised in `out` (deterministic, in-script).
    gamma = jnp.full((1,), 0.5, dtype=jnp.float32)

    out, attn = self_attention_forward(x, wq, bq, wk, bk, wv, bv, gamma)
    jax.block_until_ready((out, attn))

    out_exp, attn_exp = ref_forward(x, wq, bq, wk, bk, wv, bv, gamma)

    assert out.shape == (B, C, N) and attn.shape == (B, N, N)
    # Tolerances account for bf16 MXU operands and the approx reciprocal.
    assert jnp.allclose(attn, attn_exp, atol=2e-2, rtol=2e-2)
    assert jnp.allclose(out, out_exp, atol=2e-2, rtol=2e-2)

    print("KERNEL_OK")
</pallas_src>

<mosaic_0001>
module attributes {stable_mosaic.version = 11 : i64} {
  func.func @_self_attention_kernel(%arg0: i32, %arg1: memref<1x32x128xf32, #tpu.memory_space<vmem>>, %arg2: memref<48x32xbf16, #tpu.memory_space<vmem>>, %arg3: memref<48x1xf32, #tpu.memory_space<vmem>>, %arg4: memref<1xf32, #tpu.memory_space<smem>>, %arg5: memref<1x32x128xf32, #tpu.memory_space<vmem>>, %arg6: memref<1x128x128xf32, #tpu.memory_space<vmem>>) attributes {dimension_semantics = [#tpu.dimension_semantics<parallel>], iteration_bounds = array<i64: 2>, scalar_prefetch = 0 : i64, scratch_operands = 0 : i64, tpu.core_type = #tpu.core_type<tc>, window_params = [{transform_indices = @transform_0, window_bounds = array<i64: 1, 32, 128>}, {pipeline_mode = #tpu.pipeline_mode<synchronous>, transform_indices = @transform_1, window_bounds = array<i64: 48, 32>}, {pipeline_mode = #tpu.pipeline_mode<synchronous>, transform_indices = @transform_2, window_bounds = array<i64: 48, 1>}, {transform_indices = @transform_3, window_bounds = array<i64: 1>}, {transform_indices = @transform_4, window_bounds = array<i64: 1, 32, 128>}, {transform_indices = @transform_5, window_bounds = array<i64: 1, 128, 128>}]} {
    %c0 = arith.constant 0 : index
    %0 = memref.load %arg4[%c0] : memref<1xf32, #tpu.memory_space<smem>>
    %c0_0 = arith.constant 0 : index
    %c0_1 = arith.constant 0 : index
    %c0_2 = arith.constant 0 : index
    %1 = vector.load %arg1[%c0_0, %c0_1, %c0_2] : memref<1x32x128xf32, #tpu.memory_space<vmem>>, vector<1x32x128xf32>
    %2 = vector.shape_cast %1 : vector<1x32x128xf32> to vector<32x128xf32>
    %c0_3 = arith.constant 0 : index
    %c0_4 = arith.constant 0 : index
    %3 = vector.load %arg2[%c0_3, %c0_4] : memref<48x32xbf16, #tpu.memory_space<vmem>>, vector<48x32xbf16>
    %c0_5 = arith.constant 0 : index
    %c0_6 = arith.constant 0 : index
    %4 = vector.load %arg3[%c0_5, %c0_6] : memref<48x1xf32, #tpu.memory_space<vmem>>, vector<48x1xf32>
    %5 = arith.truncf %2 : vector<32x128xf32> to vector<32x128xbf16>
    %cst = arith.constant dense<0.000000e+00> : vector<48x128xf32>
    %6 = tpu.matmul %3, %5, %cst {dimension_numbers = #tpu.dot_dimension_numbers<[1], [0], [0], [1], [0, 0, 1, 1], [], []>} : vector<48x32xbf16>, vector<32x128xbf16>, vector<48x128xf32> -> vector<48x128xf32>
    %7 = vector.broadcast %4 : vector<48x1xf32> to vector<48x128xf32>
    %8 = arith.addf %6, %7 : vector<48x128xf32>
    %cst_7 = arith.constant 0.000000e+00 : f32
    %9 = vector.broadcast %cst_7 : f32 to vector<48x128xf32>
    %10 = arith.maximumf %8, %9 : vector<48x128xf32>
    %11 = vector.extract_strided_slice %10 {offsets = [0, 0], sizes = [8, 128], strides = [1, 1]} : vector<48x128xf32> to vector<8x128xf32>
    %12 = arith.truncf %11 : vector<8x128xf32> to vector<8x128xbf16>
    %13 = vector.extract_strided_slice %10 {offsets = [8, 0], sizes = [8, 128], strides = [1, 1]} : vector<48x128xf32> to vector<8x128xf32>
    %14 = arith.truncf %13 : vector<8x128xf32> to vector<8x128xbf16>
    %15 = vector.extract_strided_slice %10 {offsets = [16, 0], sizes = [32, 128], strides = [1, 1]} : vector<48x128xf32> to vector<32x128xf32>
    %16 = arith.truncf %15 : vector<32x128xf32> to vector<32x128xbf16>
    %cst_8 = arith.constant dense<0.000000e+00> : vector<128x128xf32>
    %17 = tpu.matmul %12, %14, %cst_8 {dimension_numbers = #tpu.dot_dimension_numbers<[0], [0], [1], [1], [0, 1, 1, 1], [], []>} : vector<8x128xbf16>, vector<8x128xbf16>, vector<128x128xf32> -> vector<128x128xf32>
    %cst_9 = arith.constant dense<0xFF800000> : vector<128xf32>
    %18 = vector.multi_reduction <maximumf>, %17, %cst_9 [1] : vector<128x128xf32> to vector<128xf32>
    %19 = vector.shape_cast %18 : vector<128xf32> to vector<128x1xf32>
    %20 = vector.broadcast %19 : vector<128x1xf32> to vector<128x128xf32>
    %21 = arith.subf %17, %20 : vector<128x128xf32>
    %22 = math.exp %21 : vector<128x128xf32>
    %cst_10 = arith.constant dense<0.000000e+00> : vector<128xf32>
    %23 = vector.multi_reduction <add>, %22, %cst_10 [1] : vector<128x128xf32> to vector<128xf32>
    %24 = vector.shape_cast %23 : vector<128xf32> to vector<128x1xf32>
    %25 = tpu.reciprocal %24 {approx = true} : vector<128x1xf32> -> vector<128x1xf32>
    %26 = vector.broadcast %25 : vector<128x1xf32> to vector<128x128xf32>
    %27 = arith.mulf %22, %26 : vector<128x128xf32>
    %c0_11 = arith.constant 0 : index
    %c0_12 = arith.constant 0 : index
    %c0_13 = arith.constant 0 : index
    %28 = vector.load %arg6[%c0_11, %c0_12, %c0_13] : memref<1x128x128xf32, #tpu.memory_space<vmem>>, vector<1x128x128xf32>
    %29 = vector.shape_cast %28 : vector<1x128x128xf32> to vector<128x128xf32>
    %30 = vector.shape_cast %27 : vector<128x128xf32> to vector<1x128x128xf32>
    tpu.vector_store %arg6[%c0_11, %c0_12, %c0_13], %30 {strides = array<i32>} : memref<1x128x128xf32, #tpu.memory_space<vmem>>, vector<1x128x128xf32>,
    %31 = arith.truncf %27 : vector<128x128xf32> to vector<128x128xbf16>
    %cst_14 = arith.constant dense<0.000000e+00> : vector<32x128xf32>
    %32 = tpu.matmul %16, %31, %cst_14 {dimension_numbers = #tpu.dot_dimension_numbers<[1], [1], [0], [0], [0, 0, 1, 0], [], []>} : vector<32x128xbf16>, vector<128x128xbf16>, vector<32x128xf32> -> vector<32x128xf32>
    %33 = vector.broadcast %0 : f32 to vector<32x128xf32>
    %34 = arith.mulf %33, %32 : vector<32x128xf32>
    %35 = arith.addf %34, %2 : vector<32x128xf32>
    %c0_15 = arith.constant 0 : index
    %c0_16 = arith.constant 0 : index
    %c0_17 = arith.constant 0 : index
    %36 = vector.load %arg5[%c0_15, %c0_16, %c0_17] : memref<1x32x128xf32, #tpu.memory_space<vmem>>, vector<1x32x128xf32>
    %37 = vector.shape_cast %36 : vector<1x32x128xf32> to vector<32x128xf32>
    %38 = vector.shape_cast %35 : vector<32x128xf32> to vector<1x32x128xf32>
    tpu.vector_store %arg5[%c0_15, %c0_16, %c0_17], %38 {strides = array<i32>} : memref<1x32x128xf32, #tpu.memory_space<vmem>>, vector<1x32x128xf32>,
    return
  }
  func.func @transform_0(%arg0: i32) -> (i32, i32, i32) {
    %c0_i32 = arith.constant 0 : i32
    %c0_i32_0 = arith.constant 0 : i32
    %c0_i32_1 = arith.constant 0 : i32
    return %arg0, %c0_i32, %c0_i32_0 : i32, i32, i32
  }
  func.func @transform_1(%arg0: i32) -> (i32, i32) {
    %c0_i32 = arith.constant 0 : i32
    %c0_i32_0 = arith.constant 0 : i32
    %c0_i32_1 = arith.constant 0 : i32
    return %c0_i32, %c0_i32_0 : i32, i32
  }
  func.func @transform_2(%arg0: i32) -> (i32, i32) {
    %c0_i32 = arith.constant 0 : i32
    %c0_i32_0 = arith.constant 0 : i32
    %c0_i32_1 = arith.constant 0 : i32
    return %c0_i32, %c0_i32_0 : i32, i32
  }
  func.func @transform_3(%arg0: i32) -> i32 {
    %c0_i32 = arith.constant 0 : i32
    %c0_i32_0 = arith.constant 0 : i32
    return %c0_i32 : i32
  }
  func.func @transform_4(%arg0: i32) -> (i32, i32, i32) {
    %c0_i32 = arith.constant 0 : i32
    %c0_i32_0 = arith.constant 0 : i32
    %c0_i32_1 = arith.constant 0 : i32
    return %arg0, %c0_i32, %c0_i32_0 : i32, i32, i32
  }
  func.func @transform_5(%arg0: i32) -> (i32, i32, i32) {
    %c0_i32 = arith.constant 0 : i32
    %c0_i32_0 = arith.constant 0 : i32
    %c0_i32_1 = arith.constant 0 : i32
    return %arg0, %c0_i32, %c0_i32_0 : i32, i32, i32
  }
}

</mosaic_0001>

<bundles_post_ra>
// kernel: self_attention_forward.1
= control target key start
LH: loop header
LB: loop body
LE: loop exit
PB: predicated region body
PF: predicated region fallthrough
CT: control target
= control target key end

     0   :  { %s1558_s0 = inlined_call_operand.vmem [shape: f32[2,32,128], index: 0, kind: input, shape index: {}]   ;;  %s1559_s1 = inlined_call_operand.vmem [shape: bf16[48,32], index: 1, kind: input, shape index: {}]   ;;  %s1560_s2 = inlined_call_operand.vmem [shape: f32[48,1], index: 2, kind: input, shape index: {}]   ;;  %s1561_s3 = inlined_call_operand.<no memory space> [shape: f32[1], index: 3, kind: input, shape index: {}]   ;;  %s1562_s4 = inlined_call_operand.hbm [shape: f32[2,32,128], index: 4, kind: output, shape index: {0}]   ;;  %s1563_s5 = inlined_call_operand.hbm [shape: f32[2,128,128], index: 5, kind: output, shape index: {1}]  }
   0x1   :  { %11 = sst [smem:[#allocation2]] %s1561_s3 }
   0x2   :  { %12 = vsyncpa [#allocation4], 0 }
   0x3   :  { %14 = vsyncpa [#allocation4 + $0x1], 0 }
   0x4   :  { %15 = vsyncpa [#allocation6], 0 }
   0x5   :  { %17 = vsyncpa [#allocation6 + $0x1], 0  ;;  %s1244_s20 = smov 0   ;;  %s1246_s21 = smov 0  }
   0x6   :  { %s1248_s22 = smov 0   ;;  %s1250_s23 = smov 0  }
   0x7 LB: > { %s1265_s3 = sadd.s32 4294967295, %s1202_s23   ;;  %s878_s24 = sadd.s32 4294967294, %s1202_s23   ;;  %s1202_s23 = sphi %s1250_s23, %s1569_s23   ;;  %s1198_s22 = sphi %s1248_s22, %s1568_s22   ;;  %s1194_s21 = sphi %s1246_s21, %s1567_s21   ;;  %s1190_s20 = sphi %s1244_s20, %s1566_s20  }
   0x8   : > { %s1269_s25 = sadd.s32 1, %s1202_s23   ;;  %s119_s26 = sadd.s32 1, %s1198_s22 }
   0x9   : > { %s116_s27 = ssub.s32 %s1202_s23, %s1269_s25  ;;  %p129_p0 = scmp.ne.s32.totalorder %s1198_s22, %s1194_s21 }
   0xa   : > { %p117_p1 = scmp.eq.s32.totalorder %s116_s27, 0  ;;  %p130_p2 = scmp.eq.s32.totalorder %s1265_s3, 1 }
   0xb   : > { %p135_p3 = scmp.ne.s32.totalorder %s1194_s21, %s1190_s20  ;;  %p136_p4 = scmp.eq.s32.totalorder %s878_s24, 1 }
   0xc   : > { %s1280_s28 = scalar_select %p117_p1, %s1198_s22, %s119_s26  }
   0xd   : > { %p1282_p5 = por %p130_p2, %p129_p0  ;;  %p1286_p6 = por %p136_p4, %p135_p3 }
   0xe   : > { %p881_p7 = scmp.ge.s32.totalorder %s1202_s23, 1  ;;  %p197_p8 = scmp.lt.s32.totalorder %s1202_s23, 3 }
  0x10   : > { %p198_p9 = pnand %p881_p7, %p197_p8 }
  0x11   : > { %p230_p10 = scmp.lt.s32.totalorder (!%p198_p9), %s1265_s3, 1  ;;  %v1204_v0 = vmov (!%p198_p9), 0.0   ;;  %vm1205_vm0 = vmmov (!%p198_p9), 0   ;;  %v247_v1 = vld [vmem:[%s1560_s2] sm:$0xff] (!%p198_p9)  ;;  %v1206_v2 = vmov (!%p198_p9), 0   ;;  %v248_v3 = vld [vmem:[%s1560_s2 + $0x8] sm:$0xff] (!%p198_p9) }
  0x12   : > { %201 = sbr.rel (%p198_p9) target bundleno = 1219 (0x4c3), region = 36  ;;  %935 = vmatprep.subr.bf16.mxu0 (!%p198_p9), %v1204_v0  ;;  %939 = vmatprep.mubr.msk.bf16.mxu0 (!%p198_p9), %vm1205_vm0, %v1204_v0  ;;  %v1041_v10 = vld [vmem:[%s1559_s1] sm:$0xff] (!%p198_p9)   ;;  %vm300_vm1 = vcmask (!%p198_p9), 261120   ;;  %v1042_v11 = vld [vmem:[%s1559_s1 + $0x8] sm:$0xff] (!%p198_p9)   ;;  %v1043_v12 = vld [vmem:[%s1559_s1 + $0x10] sm:$0xff] (!%p198_p9)   ;;  %vm418_vm2 = vcmask (!%p198_p9), 1043456  }
  0x13   : > { %1039 = vset.pattern.permute.xlu0 (!%p198_p9), %v1206_v2  ;;  %vm393_vm3 = vcmask (!%p198_p9), 64512   ;;  %s1424_s12 = sand.u32 (!%p198_p9), 1, %s1194_s21   ;;  %s910_s15 = sshll.u32 (!%p198_p9), %s1265_s3, 11 }
  0x14   : > { %257 = vperm.xlu0 (!%p198_p9), %1039, %v247_v1   ;;  %s883_s13 = sshll.u32 (!%p198_p9), %s1424_s12, 7  ;;  %s1469_s18 = scalar_lea.hbm (!%p198_p9), %s1563_s5, %s910_s15 }
  0x15   : > { %s755_s24 = scalar_lea.sflag (!%p198_p9), [#allocation6], %s1424_s12  ;;  %s1207_s27 = smov (!%p198_p9), [#allocation5]  }
  0x16   : > { %s1112_s6 = sshll.u32 (!%p198_p9), %s1207_s27, 4  ;;  %s1113_s6 = int_to_ptr.vmem [resolvable:$false] %s1112_s6 }
  0x17   : > { %s1114_s7 = scalar_lea.vmem (!%p198_p9), %s1113_s6, 4096 }
  0x18   : > { %262 = vperm.xlu0 (!%p198_p9), %1039, %v248_v3  }
  0x19   : > { %s231_s8 = scalar_select %p230_p10, %s1265_s3, 1 }
  0x1b   : > { %s908_s9 = sshll.u32 %s231_s8, 5 }
  0x1c   : > { %s234_s14 = scalar_lea.vmem %s1558_s0, %s908_s9 }
  0x1d   : > { %v1304_v4 = vld [vmem:[%s234_s14] sm:$0xff]  ;;  %v1306_v5 = vld [vmem:[%s234_s14 + $0x8] sm:$0xff]  ;;  %v1308_v6 = vld [vmem:[%s234_s14 + $0x10] sm:$0xff] }
  0x1e   : > { %v253_v7 = vpack.c.bf16 %v1306_v5, %v1304_v4  ;;  %v1312_v8 = vld [vmem:[%s234_s14 + $0x18] sm:$0xff]  ;;  %s1429_s14 = scalar_lea.vmem [#allocation5], %s883_s13 }
  0x1f   : > { %v254_v9 = vpack.c.bf16 %v1312_v8, %v1308_v6  ;;  %s784_s19 = sshll.u32 %s1429_s14, 4  ;;  %s1472_s19 = int_to_ptr.vmem [resolvable:$true] %s784_s19 }
  0x20   : > { %936 = vmatpush3.bf16.msra.mxu0 %v253_v7  ;;  %s1108_s26 = scalar_lea.vmem %s1472_s19, 2048  ;;  %p1115_p0 = scmp.lt.s32.totalorder %s1472_s19, %s1113_s6 }
  0x21   : > { %937 = vmatprep.subr.bf16.mxu0 %v1204_v0  ;;  %p1109_p11 = scmp.ne.s32.totalorder %s1472_s19, %s1108_s26  ;;  %p1116_p1 = scmp.lt.s32.totalorder %s1114_s7, %s1108_s26 }
  0x23   : > { %p1110_p12 = pnand %p1109_p11, %p1282_p5  ;;  %p1117_p2 = por %p1116_p1, %p1115_p0 }
  0x24   : > { %938 = vmatpush3.bf16.msra.mxu0 %v254_v9 }
  0x25   : > { %p1111_p13 = pneg %p1110_p12 }
  0x27   : > { %940 = vmatmul.mubr.msk.bf16.vlgmr.msra.gmra.mrb[0].mxu0 %vm300_vm1, %v1041_v10  ;;  %p1118_p3 = pnand %p1117_p2, %p1111_p13 }
  0x28   : > { %943 = vmatprep.mubr.msk.bf16.mxu0 %vm1205_vm0, %v1204_v0 }
  0x2f   : > { %944 = vmatmul.mubr.msk.bf16.gmra.mrb[4].mxu0 %vm300_vm1, %v1042_v11 }
  0x30   : > { %947 = vmatprep.mubr.msk.bf16.mxu0 %vm1205_vm0, %v1204_v0 }
  0x37   : > { %948 = vmatmul.mubr.msk.bf16.gmra.mrb[8].mxu0 %vm300_vm1, %v1043_v12 }
  0x93   : > { %v258_v13 = vpop.permute.xlu0 %257 }
  0x97   : > { %v263_v17 = vpop.permute.xlu0 %262 }
  0xfa   : > { %v344_v14 = vpop.f32.mrb[0].mxu0 }
  0xfb   : > { %v345_v15 = vadd.f32 %v344_v14, %v258_v13  ;;  %v941_v16 = vpop.f32.mrb[1].mxu0 }
  0xfc   : > { %v347_v18 = vpop.f32.mrb[2].mxu0 }
  0xfd   : > { %v348_v19 = vadd.f32 %v347_v18, %v263_v17  ;;  %v942_v20 = vpop.f32.mrb[3].mxu0  ;;  %v367_v21 = vmax.f32 %v345_v15, 0.0 }
  0xff   : > { %v368_v22 = vmax.f32 %v348_v19, 0.0  ;;  %v373_v23 = vpack.c.bf16 %v367_v21, %v367_v21 }
 0x101   : > { %v374_v24 = vpack.c.bf16 %v368_v22, %v368_v22  ;;  %377 = vxpose.xlu1.c.b16.start.end [1/1] (short) %v373_v23, 128 }
 0x102   : > { %v1327_v26 = vpop.f32.mrb[4].mxu0 }
 0x103   : > { %989 = vmatprep.subr.msk.bf16.mxu0 %vm418_vm2, %v374_v24  ;;  %v420_v25 = vsel %vm418_vm2, %v374_v24, 0  ;;  %v945_v27 = vpop.f32.mrb[5].mxu0 }
 0x104   : > { %952 = vmatpush3.bf16.msra.mxu0 %v420_v25  ;;  %v1329_v28 = vpop.f32.mrb[6].mxu0 }
 0x105   : > { %1040 = vset.pattern.permute.xlu1 %v1206_v2  ;;  %v946_v29 = vpop.f32.mrb[7].mxu0 }
 0x10a   : > { %v1331_v30 = vpop.f32.mrb[8].mxu0 }
 0x10b   : > { %v949_v31 = vpop.f32.mrb[9].mxu0 }
 0x10c   : > { %v1333_v32 = vpop.f32.mrb[10].mxu0 }
 0x10d   : > { %v950_v33 = vpop.f32.mrb[11].mxu0 }
 0x167   : > { %v385_v34 = vpop.trf.xlu1 }
 0x168   : > { %953 = vmatprep.mubr.msk.bf16.mxu0 %vm393_vm3, %v385_v34 }
 0x16b   : > { %v386_v35 = vpop.trf.xlu1 }
 0x16c   : > { %954 = vmatmul.mubr.msk.bf16.vlgmr.msra.gmra.mrb[12].mxu0 %vm393_vm3, %v386_v35 }
 0x16f   : > { %v387_v36 = vpop.trf.xlu1 }
 0x170   : > { %957 = vmatprep.mubr.msk.bf16.mxu0 %vm393_vm3, %v387_v36 }
 0x173   : > { %v388_v37 = vpop.trf.xlu1 }
 0x174   : > { %958 = vmatmul.mubr.msk.bf16.gmra.mrb[16].mxu0 %vm393_vm3, %v388_v37 }
 0x177   : > { %v389_v38 = vpop.trf.xlu1 }
 0x178   : > { %961 = vmatprep.mubr.msk.bf16.mxu0 %vm393_vm3, %v389_v38 }
 0x17b   : > { %v390_v39 = vpop.trf.xlu1 }
 0x17c   : > { %962 = vmatmul.mubr.msk.bf16.gmra.mrb[20].mxu0 %vm393_vm3, %v390_v39 }
 0x17f   : > { %v391_v40 = vpop.trf.xlu1 }
 0x180   : > { %965 = vmatprep.mubr.msk.bf16.mxu0 %vm393_vm3, %v391_v40 }
 0x183   : > { %v392_v41 = vpop.trf.xlu1 }
 0x184   : > { %966 = vmatmul.mubr.msk.bf16.gmra.mrb[24].mxu0 %vm393_vm3, %v392_v41 }
 0x23f   : > { %v955_v42 = vpop.f32.mrb[12].mxu0 }
 0x240   : > { %v456_v43 = vpop.f32.mrb[13].mxu0 }
 0x241   : > { %519 = vmax.xlane.f32.xlu1 %v456_v43  ;;  %v956_v44 = vpop.f32.mrb[14].mxu0 }
 0x242   : > { %v459_v45 = vpop.f32.mrb[15].mxu0 }
 0x243   : > { %521 = vmax.xlane.f32.xlu0 %v459_v45 }
 0x247   : > { %523 = vmax.xlane.f32.xlu0 %v955_v42  ;;  %v959_v46 = vpop.f32.mrb[16].mxu0 }
 0x248   : > { %v472_v47 = vpop.f32.mrb[17].mxu0 }
 0x249   : > { %527 = vmax.xlane.f32.xlu1 %v472_v47  ;;  %v960_v48 = vpop.f32.mrb[18].mxu0 }
 0x24a   : > { %v475_v49 = vpop.f32.mrb[19].mxu0 }
 0x24b   : > { %525 = vmax.xlane.f32.xlu0 %v956_v44 }
 0x24d   : > { %531 = vmax.xlane.f32.xlu1 %v959_v46 }
 0x24f   : > { %529 = vmax.xlane.f32.xlu0 %v475_v49  ;;  %v963_v50 = vpop.f32.mrb[20].mxu0 }
 0x250   : > { %v488_v51 = vpop.f32.mrb[21].mxu0 }
 0x251   : > { %535 = vmax.xlane.f32.xlu1 %v488_v51  ;;  %v1343_v52 = vpop.f32.mrb[22].mxu0 }
 0x252   : > { %v491_v53 = vpop.f32.mrb[23].mxu0 }
 0x253   : > { %533 = vmax.xlane.f32.xlu0 %v960_v48 }
 0x255   : > { %539 = vmax.xlane.f32.xlu1 %v963_v50 }
 0x257   : > { %537 = vmax.xlane.f32.xlu0 %v491_v53  ;;  %v1345_v54 = vpop.f32.mrb[24].mxu0 }
 0x258   : > { %v1347_v55 = vpop.f32.mrb[25].mxu0 }
 0x259   : > { %543 = vmax.xlane.f32.xlu1 %v1347_v55  ;;  %v1350_v56 = vpop.f32.mrb[26].mxu0 }
 0x25a   : > { %v1352_v57 = vpop.f32.mrb[27].mxu0 }
 0x25b   : > { %541 = vmax.xlane.f32.xlu0 %v1343_v52 }
 0x25d   : > { %547 = vmax.xlane.f32.xlu1 %v1345_v54 }
 0x25f   : > { %545 = vmax.xlane.f32.xlu0 %v1352_v57 }
 0x263   : > { %549 = vmax.xlane.f32.xlu0 %v1350_v56 }
 0x2ce   : > { %v520_v58 = vpop.xlane.xlu1 %519 }
 0x2cf   : > { %v551_v59 = vsub.f32 %v456_v43, %v520_v58 }
 0x2d0   : > { %v522_v60 = vpop.xlane.xlu0 %521 }
 0x2d1   : > { %v567_v61 = vmul.f32 1.442695, %v551_v59  ;;  %v552_v62 = vsub.f32 %v459_v45, %v522_v60 }
 0x2d3   : > { %1044 = vpow2.f32 %v567_v61  ;;  %v569_v63 = vmul.f32 1.442695, %v552_v62 }
 0x2d4   : > { %v524_v0 = vpop.xlane.xlu0 %523 }
 0x2d5   : > { %1046 = vpow2.f32 %v569_v63  ;;  %v553_v1 = vsub.f32 %v955_v42, %v524_v0  ;;  %v250_v0 = vld [vmem:[%s1560_s2 + $0x18] sm:$0xff] }
 0x2d6   : > { %v528_v2 = vpop.xlane.xlu1 %527 }
 0x2d7   : > { %v571_v3 = vmul.f32 1.442695, %v553_v1  ;;  %v555_v7 = vsub.f32 %v472_v47, %v528_v2 }
 0x2d8   : > { %v526_v9 = vpop.xlane.xlu0 %525 }
 0x2d9   : > { %1048 = vpow2.f32 %v571_v3  ;;  %v575_v10 = vmul.f32 1.442695, %v555_v7  ;;  %v554_v11 = vsub.f32 %v956_v44, %v526_v9 }
 0x2da   : > { %v532_v12 = vpop.xlane.xlu1 %531 }
 0x2db   : > { %v573_v13 = vmul.f32 1.442695, %v554_v11  ;;  %v557_v14 = vsub.f32 %v959_v46, %v532_v12  ;;  %1050 = vpow2.f32 %v575_v10 }
 0x2dc   : > { %v530_v15 = vpop.xlane.xlu0 %529 }
 0x2dd   : > { %v1358_v16 = vpop.eup %1044  ;;  %1052 = vpow2.f32 %v573_v13  ;;  %v579_v17 = vmul.f32 1.442695, %v557_v14  ;;  %v556_v18 = vsub.f32 %v475_v49, %v530_v15 }
 0x2de   : > { %v536_v19 = vpop.xlane.xlu1 %535  ;;  %599 = vadd.xlane.f32.xlu1 %v1358_v16 }
 0x2df   : > { %v1361_v20 = vpop.eup %1046  ;;  %v577_v21 = vmul.f32 1.442695, %v556_v18  ;;  %v559_v22 = vsub.f32 %v488_v51, %v536_v19  ;;  %1054 = vpow2.f32 %v579_v17 }
 0x2e0   : > { %v534_v23 = vpop.xlane.xlu0 %533  ;;  %601 = vadd.xlane.f32.xlu0 %v1361_v20 }
 0x2e1   : > { %1056 = vpow2.f32 %v577_v21  ;;  %v583_v24 = vmul.f32 1.442695, %v559_v22  ;;  %v558_v25 = vsub.f32 %v960_v48, %v534_v23 }
 0x2e2   : > { %v540_v27 = vpop.xlane.xlu1 %539 }
 0x2e3   : > { %v1364_v29 = vpop.eup %1048  ;;  %v581_v31 = vmul.f32 1.442695, %v558_v25  ;;  %v561_v33 = vsub.f32 %v963_v50, %v540_v27  ;;  %1058 = vpow2.f32 %v583_v24 }
 0x2e4   : > { %v538_v34 = vpop.xlane.xlu0 %537  ;;  %603 = vadd.xlane.f32.xlu1 %v1364_v29 }
 0x2e5   : > { %1060 = vpow2.f32 %v581_v31  ;;  %v587_v35 = vmul.f32 1.442695, %v561_v33  ;;  %v560_v36 = vsub.f32 %v491_v53, %v538_v34  ;;  %v1367_v37 = vpop.eup %1050 }
 0x2e6   : > { %v544_v61 = vpop.xlane.xlu1 %543 }
 0x2e7   : > { %v1369_v38 = vpop.eup %1052  ;;  %v585_v39 = vmul.f32 1.442695, %v560_v36  ;;  %1062 = vpow2.f32 %v587_v35  ;;  %v563_v1 = vsub.f32 %v1347_v55, %v544_v61  ;;  %v252_v55 = vld [vmem:[%s1560_s2 + $0x28] sm:$0xff] }
 0x2e8   : > { %v542_v40 = vpop.xlane.xlu0 %541  ;;  %607 = vadd.xlane.f32.xlu1 %v1367_v37  ;;  %605 = vadd.xlane.f32.xlu0 %v1369_v38 }
 0x2e9   : > { %1064 = vpow2.f32 %v585_v39  ;;  %v562_v41 = vsub.f32 %v1343_v52, %v542_v40  ;;  %v1374_v42 = vpop.eup %1054  ;;  %v591_v3 = vmul.f32 1.442695, %v563_v1 }
 0x2ea   : > { %v548_v62 = vpop.xlane.xlu1 %547 }
 0x2eb   : > { %v1376_v43 = vpop.eup %1056  ;;  %v589_v44 = vmul.f32 1.442695, %v562_v41  ;;  %v565_v63 = vsub.f32 %v1345_v54, %v548_v62  ;;  %v251_v54 = vld [vmem:[%s1560_s2 + $0x20] sm:$0xff] }
 0x2ec   : > { %611 = vadd.xlane.f32.xlu1 %v1374_v42  ;;  %609 = vadd.xlane.f32.xlu0 %v1376_v43  ;;  %v546_v45 = vpop.xlane.xlu0 %545 }
 0x2ed   : > { %1066 = vpow2.f32 %v589_v44  ;;  %v1380_v46 = vpop.eup %1058  ;;  %v564_v49 = vsub.f32 %v1352_v57, %v546_v45  ;;  %v595_v2 = vmul.f32 1.442695, %v565_v63 }
 0x2ef   : > { %v1382_v47 = vpop.eup %1060  ;;  %v593_v58 = vmul.f32 1.442695, %v564_v49 }
 0x2f0   : > { %615 = vadd.xlane.f32.xlu1 %v1380_v46  ;;  %613 = vadd.xlane.f32.xlu0 %v1382_v47  ;;  %v550_v48 = vpop.xlane.xlu0 %549 }
 0x2f1   : > { %v566_v50 = vsub.f32 %v1350_v56, %v550_v48  ;;  %v1388_v51 = vpop.eup %1062  ;;  %v249_v56 = vld [vmem:[%s1560_s2 + $0x10] sm:$0xff] }
 0x2f3   : > { %v1390_v52 = vpop.eup %1064  ;;  %v597_v53 = vmul.f32 1.442695, %v566_v50 }
 0x2f4   : > { %619 = vadd.xlane.f32.xlu1 %v1388_v51  ;;  %617 = vadd.xlane.f32.xlu0 %v1390_v52 }
 0x2f5   : > { %1068 = vpow2.f32 %v597_v53 }
 0x2f6   : > { %1070 = vpow2.f32 %v593_v58 }
 0x2f7   : > { %v1394_v59 = vpop.eup %1066  ;;  %1072 = vpow2.f32 %v595_v2 }
 0x2f8   : > { %621 = vadd.xlane.f32.xlu0 %v1394_v59  ;;  %1074 = vpow2.f32 %v591_v3 }
 0x2ff   : > { %v1397_v60 = vpop.eup %1068 }
 0x300   : > { %629 = vadd.xlane.f32.xlu0 %v1397_v60  ;;  %v1403_v57 = vpop.eup %1070 }
 0x301   : > { %v1411_v7 = vpop.eup %1072 }
 0x302   : > { %v1414_v9 = vpop.eup %1074 }
 0x304   : > { %625 = vadd.xlane.f32.xlu0 %v1403_v57 }
 0x305   : > { %267 = vperm.xlu1 %1040, %v249_v56  }
 0x31a   : > { %272 = vperm.xlu0 %1039, %v250_v0  }
 0x329   : > { %627 = vadd.xlane.f32.xlu1 %v1411_v7 }
 0x32d   : > { %623 = vadd.xlane.f32.xlu1 %v1414_v9 }
 0x33e   : > { %277 = vperm.xlu1 %1040, %v251_v54  }
 0x342   : > { %282 = vperm.xlu1 %1040, %v252_v55  }
 0x36b   : > { %v600_v10 = vpop.xlane.xlu1 %599 }
 0x36c   : > { %1076 = vrcp.f32 %v600_v10 }
 0x36d   : > { %v602_v11 = vpop.xlane.xlu0 %601 }
 0x36e   : > { %1078 = vrcp.f32 %v602_v11 }
 0x371   : > { %v604_v12 = vpop.xlane.xlu1 %603 }
 0x372   : > { %1080 = vrcp.f32 %v604_v12 }
 0x375   : > { %v608_v13 = vpop.xlane.xlu1 %607  ;;  %v606_v14 = vpop.xlane.xlu0 %605 }
 0x376   : > { %v1077_v15 = vpop.eup %1076  ;;  %1082 = vrcp.f32 %v608_v13 }
 0x377   : > { %1084 = vrcp.f32 %v606_v14  ;;  %v647_v17 = vmul.f32 %v1077_v15, %v1358_v16 }
 0x378   : > { %v1079_v18 = vpop.eup %1078 }
 0x379   : > { %v612_v19 = vpop.xlane.xlu1 %611  ;;  %v610_v21 = vpop.xlane.xlu0 %609  ;;  %v648_v22 = vmul.f32 %v1079_v18, %v1361_v20  ;;  %663 = vst [vmem:[%s1429_s14] sm:$0xff] %v647_v17 }
 0x37a   : > { %1086 = vrcp.f32 %v612_v19 }
 0x37b   : > { %1088 = vrcp.f32 %v610_v21  ;;  %664 = vst [vmem:[%s1429_s14 + $0x8] sm:$0xff] %v648_v22  ;;  %v679_v23 = vpack.c.bf16 %v648_v22, %v647_v17 }
 0x37c   : > { %v1081_v24 = vpop.eup %1080 }
 0x37d   : > { %v616_v25 = vpop.xlane.xlu1 %615  ;;  %969 = vmatprep.subr.bf16.mxu1 %v679_v23  ;;  %v614_v16 = vpop.xlane.xlu0 %613  ;;  %v649_v27 = vmul.f32 %v1081_v24, %v1364_v29 }
 0x37e   : > { %1090 = vrcp.f32 %v616_v25  ;;  %970 = vmatpush3.bf16.xpose.msra.mxu1 %v679_v23 }
 0x37f   : > { %1092 = vrcp.f32 %v614_v16  ;;  %665 = vst [vmem:[%s1429_s14 + $0x10] sm:$0xff] %v649_v27 }
 0x380   : > { %v1083_v20 = vpop.eup %1082 }
 0x381   : > { %v1085_v31 = vpop.eup %1084  ;;  %v620_v33 = vpop.xlane.xlu1 %619  ;;  %v651_v35 = vmul.f32 %v1083_v20, %v1367_v37 }
 0x382   : > { %v618_v34 = vpop.xlane.xlu0 %617  ;;  %1094 = vrcp.f32 %v620_v33  ;;  %v650_v36 = vmul.f32 %v1085_v31, %v1369_v38 }
 0x383   : > { %1096 = vrcp.f32 %v618_v34  ;;  %667 = vst [vmem:[%s1429_s14 + $0x20] sm:$0xff] %v651_v35 }
 0x384   : > { %v1087_v39 = vpop.eup %1086  ;;  %666 = vst [vmem:[%s1429_s14 + $0x18] sm:$0xff] %v650_v36  ;;  %v680_v29 = vpack.c.bf16 %v650_v36, %v649_v27 }
 0x385   : > { %v1089_v40 = vpop.eup %1088  ;;  %v653_v44 = vmul.f32 %v1087_v39, %v1374_v42  ;;  %v268_v63 = vpop.permute.xlu1 %267 }
 0x386   : > { %v622_v41 = vpop.xlane.xlu0 %621  ;;  %971 = vmatprep.subr.bf16.mxu1 %v680_v29  ;;  %v652_v45 = vmul.f32 %v1089_v40, %v1376_v43  ;;  %v353_v1 = vadd.f32 %v1327_v26, %v268_v63 }
 0x387   : > { %1098 = vrcp.f32 %v622_v41  ;;  %972 = vmatpush3.bf16.xpose.msra.mxu1 %v680_v29  ;;  %669 = vst [vmem:[%s1429_s14 + $0x30] sm:$0xff] %v653_v44 }
 0x388   : > { %v1091_v37 = vpop.eup %1090  ;;  %668 = vst [vmem:[%s1429_s14 + $0x28] sm:$0xff] %v652_v45  ;;  %v681_v38 = vpack.c.bf16 %v652_v45, %v651_v35  ;;  %v369_v55 = vmax.f32 %v353_v1, 0.0 }
 0x389   : > { %v1093_v48 = vpop.eup %1092  ;;  %v655_v49 = vmul.f32 %v1091_v37, %v1380_v46 }
 0x38a   : > { %973 = vmatprep.subr.bf16.mxu1 %v681_v38  ;;  %v654_v50 = vmul.f32 %v1093_v48, %v1382_v47 }
 0x38b   : > { %671 = vst [vmem:[%s1429_s14 + $0x40] sm:$0xff] %v655_v49 }
 0x38c   : > { %v1095_v53 = vpop.eup %1094  ;;  %670 = vst [vmem:[%s1429_s14 + $0x38] sm:$0xff] %v654_v50  ;;  %v682_v56 = vpack.c.bf16 %v654_v50, %v653_v44 }
 0x38d   : > { %v1097_v42 = vpop.eup %1096  ;;  %v630_v58 = vpop.xlane.xlu0 %629  ;;  %v657_v43 = vmul.f32 %v1095_v53, %v1388_v51 }
 0x38e   : > { %1100 = vrcp.f32 %v630_v58  ;;  %v656_v61 = vmul.f32 %v1097_v42, %v1390_v52 }
 0x38f   : > { %974 = vmatpush3.bf16.xpose.msra.mxu1 %v681_v38  ;;  %673 = vst [vmem:[%s1429_s14 + $0x50] sm:$0xff] %v657_v43 }
 0x390   : > { %975 = vmatprep.subr.bf16.mxu1 %v682_v56  ;;  %672 = vst [vmem:[%s1429_s14 + $0x48] sm:$0xff] %v656_v61  ;;  %v683_v0 = vpack.c.bf16 %v656_v61, %v655_v49 }
 0x391   : > { %v1099_v62 = vpop.eup %1098  ;;  %v626_v46 = vpop.xlane.xlu0 %625 }
 0x392   : > { %v658_v47 = vmul.f32 %v1099_v62, %v1394_v59  ;;  %1102 = vrcp.f32 %v626_v46 }
 0x394   : > { %674 = vst [vmem:[%s1429_s14 + $0x58] sm:$0xff] %v658_v47  ;;  %v684_v11 = vpack.c.bf16 %v658_v47, %v657_v43 }
 0x397   : > { %976 = vmatpush3.bf16.xpose.msra.mxu1 %v682_v56 }
 0x398   : > { %v1101_v51 = vpop.eup %1100  ;;  %977 = vmatprep.subr.bf16.mxu1 %v683_v0 }
 0x399   : > { %v273_v52 = vpop.permute.xlu0 %272  ;;  %v662_v2 = vmul.f32 %v1101_v51, %v1397_v60 }
 0x39a   : > { %v356_v3 = vadd.f32 %v1329_v28, %v273_v52 }
 0x39b   : > { %678 = vst [vmem:[%s1429_s14 + $0x78] sm:$0xff] %v662_v2 }
 0x39c   : > { %v1103_v54 = vpop.eup %1102  ;;  %v370_v10 = vmax.f32 %v356_v3, 0.0 }
 0x39d   : > { %v660_v59 = vmul.f32 %v1103_v54, %v1403_v57 }
 0x39e   : > { %v375_v12 = vpack.c.bf16 %v370_v10, %v369_v55 }
 0x39f   : > { %978 = vmatpush3.bf16.xpose.msra.mxu1 %v683_v0  ;;  %676 = vst [vmem:[%s1429_s14 + $0x68] sm:$0xff] %v660_v59 }
 0x3a0   : > { %979 = vmatprep.subr.bf16.mxu1 %v684_v11  ;;  %985 = vmatprep.mubr.bf16.mxu1 %v375_v12 }
 0x3a7   : > { %980 = vmatpush3.bf16.xpose.msra.mxu1 %v684_v11 }
 0x3b6   : > { %v628_v26 = vpop.xlane.xlu1 %627 }
 0x3b7   : > { %1104 = vrcp.f32 %v628_v26 }
 0x3ba   : > { %v624_v60 = vpop.xlane.xlu1 %623 }
 0x3bb   : > { %1106 = vrcp.f32 %v624_v60 }
 0x3be   : > { %v278_v28 = vpop.permute.xlu1 %277 }
 0x3bf   : > { %v361_v14 = vadd.f32 %v1331_v30, %v278_v28 }
 0x3c1   : > { %v1105_v13 = vpop.eup %1104  ;;  %v371_v19 = vmax.f32 %v361_v14, 0.0 }
 0x3c2   : > { %v283_v15 = vpop.permute.xlu1 %282  ;;  %v661_v57 = vmul.f32 %v1105_v13, %v1411_v7 }
 0x3c3   : > { %v364_v17 = vadd.f32 %v1333_v32, %v283_v15 }
 0x3c4   : > { %677 = vst [vmem:[%s1429_s14 + $0x70] sm:$0xff] %v661_v57  ;;  %v686_v30 = vpack.c.bf16 %v662_v2, %v661_v57 }
 0x3c5   : > { %v1107_v18 = vpop.eup %1106  ;;  %v372_v21 = vmax.f32 %v364_v17, 0.0 }
 0x3c6   : > { %v659_v22 = vmul.f32 %v1107_v18, %v1414_v9 }
 0x3c7   : > { %v376_v23 = vpack.c.bf16 %v372_v21, %v371_v19 }
 0x3c8   : > { %675 = vst [vmem:[%s1429_s14 + $0x60] sm:$0xff] %v659_v22  ;;  %v685_v24 = vpack.c.bf16 %v660_v59, %v659_v22 }
 0x3ca   : > { %981 = vmatprep.subr.bf16.mxu1 %v685_v24 }
 0x3cb   : > { %982 = vmatpush3.bf16.xpose.msra.mxu1 %v685_v24 }
 0x3cc   : > { %983 = vmatprep.subr.bf16.mxu1 %v686_v30 }
 0x3d3   : > { %984 = vmatpush3.bf16.xpose.msra.mxu1 %v686_v30 }
 0x3da   : > { %986 = vmatmul.mubr.bf16.vlgmr.msra.gmra.mrb[0].mxu1 %v376_v23 }
 0x3db   : > { %1121 = shalt.err (!%p1118_p3)
}
 0x3dc   : > { %s1122_s8 = scalar_lea.hbm %s1469_s18, 2048  ;;  %s1126_s11 = scalar_lea.hbm %s1563_s5, 4096 }
 0x3dd   : > { %p1123_p4 = scmp.ne.s32.totalorder %s1469_s18, %s1122_s8  ;;  %p1127_p9 = scmp.lt.u32.totalorder %s1469_s18, %s1563_s5 }
 0x3de   : > { %p1128_p10 = scmp.lt.u32.totalorder %s1126_s11, %s1122_s8  ;;  %p1130_p12 = scmp.lt.u32.totalorder %s1122_s8, %s1469_s18 }
 0x3df   : > { %p1124_p7 = pnand %p1123_p4, %p1282_p5 }
 0x3e0   : > { %p1129_p11 = por %p1128_p10, %p1127_p9 }
 0x3e1   : > { %p1125_p8 = pneg %p1124_p7 }
 0x3e2   : > { %p1131_p13 = por %p1130_p12, %p1129_p11 }
 0x3e4   : > { %p1132_p0 = pnand %p1131_p13, %p1125_p8 }
 0x3e6   : > { %1135 = shalt.err (!%p1132_p0)
}
 0x3e7   : > { %s1208_s15 = smov 128   ;;  %s1209_s16 = smov 8  }
 0x3e8   : > { %991 = dma.vmem_to_hbm [thread:$0]  (%p1282_p5), %s1472_s19, 2048, %s1469_s18, %s755_s24, %s1208_s15, %s1208_s15, %s1209_s16  }
 0x3e9   : > { %s236_s17 = sld [smem:[#allocation2]]  ;;  %s882_s26 = sshll.u32 %s1424_s12, 5 }
 0x3ea   : > { %s222_s27 = scalar_lea.vmem [#allocation3], %s882_s26  ;;  %s909_s7 = sshll.u32 %s1265_s3, 9 }
 0x3eb   : > { %s768_s6 = sshll.u32 %s222_s27, 4  ;;  %s1512_s24 = scalar_lea.hbm %s1562_s4, %s909_s7  ;;  %s1505_s6 = int_to_ptr.vmem [resolvable:$true] %s768_s6 }
 0x3ec   : > { %s750_s3 = scalar_lea.sflag [#allocation4], %s1424_s12  ;;  %s1136_s8 = scalar_lea.vmem %s1505_s6, 512 }
 0x3ed   : > { %p1137_p1 = scmp.ne.s32.totalorder %s1505_s6, %s1136_s8  ;;  %s1210_s9 = smov [#allocation3]  }
 0x3ee   : > { %s1140_s10 = sshll.u32 %s1210_s9, 4  ;;  %s1141_s10 = int_to_ptr.vmem [resolvable:$false] %s1140_s10 }
 0x3ef   : > { %v736_v32 = vstv %s236_s17  ;;  %p1138_p2 = pnand %p1137_p1, %p1282_p5  ;;  %s1142_s11 = scalar_lea.vmem %s1141_s10, 1024 }
 0x3f0   : > { %p1143_p4 = scmp.lt.s32.totalorder %s1505_s6, %s1141_s10  ;;  %p1144_p7 = scmp.lt.s32.totalorder %s1142_s11, %s1136_s8 }
 0x3f1   : > { %p1139_p3 = pneg %p1138_p2 }
 0x3f2   : > { %p1145_p8 = por %p1144_p7, %p1143_p4 }
 0x3f4   : > { %p1146_p9 = pnand %p1145_p8, %p1139_p3 }
 0x4ad   : > { %v987_v7 = vpop.f32.mrb[0].mxu1 }
 0x4ae   : > { %v739_v9 = vmul.f32 %v987_v7, %v736_v32  ;;  %v721_v25 = vpop.f32.mrb[1].mxu1 }
 0x4af   : > { %v737_v16 = vmul.f32 %v736_v32, %v721_v25  ;;  %v988_v27 = vpop.f32.mrb[2].mxu1 }
 0x4b0   : > { %v743_v20 = vadd.f32 %v739_v9, %v1308_v6  ;;  %v740_v31 = vmul.f32 %v988_v27, %v736_v32  ;;  %v724_v33 = vpop.f32.mrb[3].mxu1 }
 0x4b1   : > { %v741_v34 = vadd.f32 %v737_v16, %v1304_v4  ;;  %v738_v35 = vmul.f32 %v736_v32, %v724_v33 }
 0x4b2   : > { %747 = vst [vmem:[%s222_s27 + $0x10] sm:$0xff] %v743_v20  ;;  %v744_v36 = vadd.f32 %v740_v31, %v1312_v8 }
 0x4b3   : > { %745 = vst [vmem:[%s222_s27] sm:$0xff] %v741_v34  ;;  %v742_v39 = vadd.f32 %v738_v35, %v1306_v5 }
 0x4b4   : > { %748 = vst [vmem:[%s222_s27 + $0x18] sm:$0xff] %v744_v36 }
 0x4b5   : > { %746 = vst [vmem:[%s222_s27 + $0x8] sm:$0xff] %v742_v39 }
 0x4b6   : > { %1149 = shalt.err (!%p1146_p9)
}
 0x4b7   : > { %s1150_s13 = scalar_lea.hbm %s1512_s24, 512  ;;  %s1154_s26 = scalar_lea.hbm %s1562_s4, 1024 }
 0x4b8   : > { %p1151_p10 = scmp.ne.s32.totalorder %s1512_s24, %s1150_s13  ;;  %p1155_p13 = scmp.lt.u32.totalorder %s1512_s24, %s1562_s4 }
 0x4b9   : > { %p1156_p0 = scmp.lt.u32.totalorder %s1154_s26, %s1150_s13  ;;  %p1158_p2 = scmp.lt.u32.totalorder %s1150_s13, %s1512_s24 }
 0x4ba   : > { %p1152_p11 = pnand %p1151_p10, %p1282_p5 }
 0x4bb   : > { %p1157_p1 = por %p1156_p0, %p1155_p13 }
 0x4bc   : > { %p1153_p12 = pneg %p1152_p11 }
 0x4bd   : > { %p1159_p3 = por %p1158_p2, %p1157_p1 }
 0x4bf   : > { %p1160_p4 = pnand %p1159_p3, %p1153_p12 }
 0x4c1   : > { %1163 = shalt.err (!%p1160_p4)
}
 0x4c2   : > { %990 = dma.vmem_to_hbm [thread:$0]  (%p1282_p5), %s1505_s6, 512, %s1512_s24, %s750_s3, %s1208_s15, %s1208_s15, %s1209_s16  }
 0x4c3 PF: > { %p1001_p7 = scmp.ge.s32.totalorder %s1202_s23, 2  ;;  %s799_s18 = sand.u32 1, %s1190_s20  }
 0x4c4   : > { %s800_s19 = scalar_lea.sflag [#allocation4], %s799_s18 }
 0x4c5   : > { %p995_p8 = pnand %p1001_p7, %p1286_p6 }
 0x4c7   : > { %1181 = dma.done.wait (!%p995_p8), %s800_s19, 512  }
 0x4c8   : > { %1183 = vsyncadd (!%p995_p8), %s800_s19, 4294966784  ;;  %s809_s29 = scalar_lea.sflag [#allocation6], %s799_s18 }
 0x4c9   : > { %1185 = dma.done.wait (!%p995_p8), %s809_s29, 2048  }
 0x4ca   : > { %1187 = vsyncadd (!%p995_p8), %s809_s29, 4294965248  ;;  %p20_p5 = scmp.ge.s32.totalorder %s1269_s25, 4   ;;  %s1566_s20 = smov %s1194_s21 }
 0x4cb   : > { %s1567_s21 = smov %s1198_s22  ;;  %s1568_s22 = smov %s1280_s28 }
 0x4cc   : > { %s1569_s23 = smov %s1269_s25  ;;  %22 = sbr.rel (!%p20_p5) target bundleno = 7 (0x7), region = 88 }
 0x4d3   :  { %814 = vsyncpa [#allocation4], 1 }
 0x4d4   :  { %816 = vsyncpa [#allocation4 + $0x1], 1 }
 0x4d5   :  { %817 = vsyncpa [#allocation6], 1 }
 0x4d6   :  { %819 = vsyncpa [#allocation6 + $0x1], 1 }

</bundles_post_ra>
